<compile_context>
chip_gen: v7x
topology: tpu7x:2x2x1
jax: 0.10.0
libtpu: 0.0.40
codegen_flags: <defaults>
</compile_context>

<pallas_src>
import functools
import math

import jax
import jax.numpy as jnp
from jax.experimental import pallas as pl
from jax.experimental.pallas import tpu as pltpu

# ----------------------------- config ---------------------------------------
B = 2
SEQ_LEN = 8
D_MODEL = 32
MAX_LEN = 5000      # same default as the PyTorch module
DROPOUT_P = 0.1     # eval mode -> identity


# ----------------------------- PE buffer (== torch register_buffer) ----------
def make_pe_buffer(max_len, d_model):
    """Identical construction to PositionalEncoding.__init__."""
    pos = jnp.arange(max_len, dtype=jnp.float32)[:, None]
    div = jnp.exp(
        jnp.arange(0, d_model, 2, dtype=jnp.float32) * (-math.log(10000.0) / d_model)
    )
    pe = jnp.zeros((max_len, d_model), jnp.float32)
    pe = pe.at[:, 0::2].set(jnp.sin(pos * div))
    pe = pe.at[:, 1::2].set(jnp.cos(pos * div))
    return pe  # (max_len, d_model)


def init_positional_encoding(seq_len, d_model, max_len=MAX_LEN, dtype=jnp.float32):
    """One-time setup: build the buffer AND the per-length slice, hoisted out of the
    per-call path.  Returns the cached lane-dense (1, seq_len * d_model) PE row."""
    pe = make_pe_buffer(max_len, d_model)
    pe_row = pe[:seq_len].reshape(1, seq_len * d_model).astype(dtype)
    return jax.device_put(pe_row)


# ----------------------------- Pallas kernel ---------------------------------
def _pe_add_kernel(x_ref, pe_ref, o_ref):
    """x: (rows, L*D) lane-dense slab.  pe: (1, L*D), broadcast over rows on the VPU.

    out = x + pe   (dropout is identity in eval mode)
    """
    o_ref[...] = x_ref[...] + pe_ref[...]


# ----------------------------- wrapper ---------------------------------------
@functools.partial(jax.jit, static_argnames=("batch_block",), donate_argnums=(0,))
def positional_encoding_forward(x, pe_row, batch_block=None):
    """Matches PositionalEncoding.forward in eval mode: x + pe[:, :L].

    pe_row is the cached (1, L*D) row from init_positional_encoding().
    batch_block=None -> single no-grid call (small shapes); otherwise tile over
    batch rows in blocks of `batch_block`.
    """
    b, l, d = x.shape
    ld = l * d
    assert pe_row.shape == (1, ld), "cached PE row must match (1, L*D)"

    # Lane-dense view of the activation (last dim = L*D, multiple of 128 here).
    # NOTE: relies on row-major (L, D) ordering of both x and the cached PE row.
    x2 = x.reshape(b, ld)

    if batch_block is None or batch_block >= b:
        # Small slab: one invocation, whole arrays resident in VMEM, no grid /
        # pipeline bookkeeping.  Alias the activation buffer to the output.
        out = pl.pallas_call(
            _pe_add_kernel,
            out_shape=jax.ShapeDtypeStruct((b, ld), x.dtype),
            in_specs=[
                pl.BlockSpec(memory_space=pltpu.MemorySpace.VMEM),  # activation slab
                pl.BlockSpec(memory_space=pltpu.MemorySpace.VMEM),  # PE row
            ],
            out_specs=pl.BlockSpec(memory_space=pltpu.MemorySpace.VMEM),
            input_output_aliases={0: 0},  # x2 -> out (pure elementwise, safe)
        )(x2, pe_row)
    else:
        # Larger batches: tile over batch rows; "parallel" lets multi-TC parts
        # (v7x) split the elementwise work; cap scoped VMEM explicitly so the
        # same tiling compiles on v7x's smaller VMEM.
        nblk = pl.cdiv(b, batch_block)
        out = pl.pallas_call(
            _pe_add_kernel,
            out_shape=jax.ShapeDtypeStruct((b, ld), x.dtype),
            grid=(nblk,),
            in_specs=[
                pl.BlockSpec((batch_block, ld), lambda i: (i, 0)),
                pl.BlockSpec((1, ld), lambda i: (0, 0)),  # PE row resident in VMEM
            ],
            out_specs=pl.BlockSpec((batch_block, ld), lambda i: (i, 0)),
            input_output_aliases={0: 0},
            compiler_params=pltpu.CompilerParams(
                dimension_semantics=("parallel",),
                vmem_limit_bytes=32 * 1024 * 1024,
            ),
        )(x2, pe_row)

    # TODO(synk): training-mode dropout (mask + 1/(1-p) scale via pltpu.prng_*)
    # is not implemented; forward here follows eval() semantics (identity).
    return out.reshape(b, l, d)


# ----------------------------- main ------------------------------------------
if __name__ == "__main__":
    key = jax.random.PRNGKey(0)
    k1, k2 = jax.random.split(key)

    # One-time init (buffer build + slice hoisted out of the per-call path).
    pe_row = init_positional_encoding(SEQ_LEN, D_MODEL)
    pe_ref = make_pe_buffer(MAX_LEN, D_MODEL)[:SEQ_LEN]  # for the plain-JAX reference

    # --- primary small-shape test (no-grid fast path) -------------------------
    x = jax.random.normal(k1, (B, SEQ_LEN, D_MODEL), jnp.float32)
    ref = x + pe_ref[None, :, :]          # compute BEFORE the call (x is donated)
    out = positional_encoding_forward(x, pe_row)
    out = jax.block_until_ready(out)

    assert out.shape == (B, SEQ_LEN, D_MODEL)
    assert bool(jnp.allclose(out, ref, atol=1e-6, rtol=1e-6))
    assert bool(jnp.all(jnp.isfinite(out)))

    # --- secondary check: exercise the batch-tiled ("parallel") path ----------
    xb = jax.random.normal(k2, (16, SEQ_LEN, D_MODEL), jnp.float32)
    refb = xb + pe_ref[None, :, :]
    outb = positional_encoding_forward(xb, pe_row, batch_block=8)
    outb = jax.block_until_ready(outb)
    assert bool(jnp.allclose(outb, refb, atol=1e-6, rtol=1e-6))

    print("KERNEL_OK")
</pallas_src>

<mosaic_0001>
module attributes {stable_mosaic.version = 11 : i64} {
  func.func @_pe_add_kernel(%arg0: memref<2x256xf32, #tpu.memory_space<vmem>>, %arg1: memref<1x256xf32, #tpu.memory_space<vmem>>, %arg2: memref<2x256xf32, #tpu.memory_space<vmem>>) attributes {dimension_semantics = [], scalar_prefetch = 0 : i64, scratch_operands = 0 : i64, tpu.core_type = #tpu.core_type<tc>} {
    %c0 = arith.constant 0 : index
    %c0_0 = arith.constant 0 : index
    %0 = vector.load %arg0[%c0, %c0_0] : memref<2x256xf32, #tpu.memory_space<vmem>>, vector<2x256xf32>
    %c0_1 = arith.constant 0 : index
    %c0_2 = arith.constant 0 : index
    %1 = vector.load %arg1[%c0_1, %c0_2] : memref<1x256xf32, #tpu.memory_space<vmem>>, vector<1x256xf32>
    %2 = vector.broadcast %1 : vector<1x256xf32> to vector<2x256xf32>
    %3 = arith.addf %0, %2 : vector<2x256xf32>
    %c0_3 = arith.constant 0 : index
    %c0_4 = arith.constant 0 : index
    %4 = vector.load %arg2[%c0_3, %c0_4] : memref<2x256xf32, #tpu.memory_space<vmem>>, vector<2x256xf32>
    tpu.vector_store %arg2[%c0_3, %c0_4], %3 {strides = array<i32>} : memref<2x256xf32, #tpu.memory_space<vmem>>, vector<2x256xf32>,
    return
  }
}

</mosaic_0001>

<bundles_post_ra>
// kernel: positional_encoding_forward.1
= control target key start
LH: loop header
LB: loop body
LE: loop exit
PB: predicated region body
PF: predicated region fallthrough
CT: control target
= control target key end

     0   :  { %v14_v0 = vlaneseq  ;;  %v38_v1 = vmov 1983009808   ;;  %s63_s1 = inlined_call_operand.vmem [shape: f32[1,256], index: 1, kind: input, shape index: {}]   ;;  %s64_s0 = inlined_call_operand.vmem [shape: f32[2,256], index: 0, kind: input, shape index: {}, may-alias: {0,2}]   ;;  %s65_s2 = inlined_call_operand.vmem [shape: f32[2,256], index: 2, kind: output, shape index: {}, may-alias: {0,2}]  }
   0x1   :  { %v24_v2 = vunpack.c.l.s4 %v38_v1  ;;  %v12_v4 = vld [vmem:[%s63_s1] sm:$0x3] }
   0x2   :  { %v15_v3 = vshrl.u32 %v14_v0, 7  ;;  %v11_v12 = vld [vmem:[%s64_s0] sm:$0xf] }
   0x3   :  { %v25_v5 = vunpack.c.0.s8 %v24_v2 }
   0x4   :  { %v16_v6 = vsub.s32 0, %v15_v3  ;;  %v20_v7 = vsub.s32 1, %v15_v3 }
   0x5   :  { %v28_v10 = vsub.s32 %v25_v5, %v15_v3 }
   0x6   :  { %v17_v8 = vrot.slane %v12_v4, %v16_v6  ;;  %v21_v9 = vrot.slane %v12_v4, %v20_v7 }
   0x8   :  { %v22_v11 = vcombine.low %v17_v8, %v21_v9 }
   0xa   :  { %v29_v13 = vrot.slane %v22_v11, %v28_v10 }
   0xc   :  { %v31_v14 = vadd.f32 %v29_v13, %v11_v12 }
   0xe   :  { %32 = vst [vmem:[%s65_s2] sm:$0xf] %v31_v14 }

</bundles_post_ra>
